<compile_context>
chip_gen: v7x
topology: tpu7x:2x2x1
jax: 0.10.0
libtpu: 0.0.40
codegen_flags: <defaults>
</compile_context>

<pallas_src>
import jax
import jax.numpy as jnp
from jax.experimental import pallas as pl
from jax.experimental.pallas import tpu as pltpu


def _identity_copy_kernel(x_ref, o_ref):
    # Pure elementwise copy of the current (tile_r, C) block.
    o_ref[...] = x_ref[...]


# Sublane packing unit per dtype width (rows round to this for clean layouts).
_SUBLANE_PACK = {4: 8, 2: 16, 1: 32}

# VMEM budget for in + out, double-buffered (4 * tile bytes). Conservative so
# it fits every generation's scoped VMEM (v7x: 32 MiB scoped / 64 MiB phys).
_VMEM_TILE_BUDGET = 8 * 1024 * 1024
_MAX_LANES = 16 * 1024  # cap the lane-dense width


def _lane_dense_view(x):
    """Return a 2-D view of x whose last dim is a big multiple of 128 if possible."""
    n = x.size
    if n % 128 == 0:
        max_k = min(n // 128, _MAX_LANES // 128)
        lanes = 128
        for k in range(max_k, 0, -1):
            if n % (128 * k) == 0:
                lanes = 128 * k
                break
        return x.reshape(n // lanes, lanes)
    if x.ndim == 2:
        return x
    return x.reshape(1, n)


def pallas_identity_copy(x):
    """Explicit-materialization identity: copies x into a fresh buffer via Pallas."""
    orig_shape = x.shape
    x2 = _lane_dense_view(x)
    R, C = x2.shape
    itemsize = jnp.dtype(x2.dtype).itemsize
    sub = _SUBLANE_PACK.get(itemsize, 8)

    # Largest row tile (multiple of the sublane pack unit) within the budget.
    max_rows = (_VMEM_TILE_BUDGET // (4 * C * itemsize)) // sub * sub
    max_rows = max(sub, max_rows)
    if R <= max_rows:
        tile_r = R  # single block == full array dims (always layout-legal)
    else:
        tile_r = max_rows  # multiple of sub; partial last block is masked by Pallas

    grid = (pl.cdiv(R, tile_r),)

    out2 = pl.pallas_call(
        _identity_copy_kernel,
        out_shape=jax.ShapeDtypeStruct((R, C), x2.dtype),
        grid=grid,
        in_specs=[pl.BlockSpec((tile_r, C), lambda i: (i, 0))],
        out_specs=pl.BlockSpec((tile_r, C), lambda i: (i, 0)),
        compiler_params=pltpu.CompilerParams(
            dimension_semantics=("parallel",),
            vmem_limit_bytes=32 * 1024 * 1024,
        ),
    )(x2)
    return out2.reshape(orig_shape)


def identity_encoder_forward(obs, detach=False, materialize=False):
    """Pallas/JAX implementation of IdentityEncoder.forward.

    Identity requires zero work, so by default this returns `obs` directly
    (the biggest possible optimization: no HBM round-trip, no kernel launch).
    Set materialize=True to force a fresh buffer via the tuned Pallas copy.
    """
    out = jax.lax.stop_gradient(obs) if detach else obs
    if not materialize:
        return out
    return pallas_identity_copy(out)


class IdentityEncoder:
    """Mirror of the PyTorch module's interface (no parameters)."""

    def __init__(self, obs_shape, feature_dim, num_layers, num_filters):
        assert len(obs_shape) == 1
        self.feature_dim = obs_shape[0]

    def __call__(self, obs, detach=False, materialize=False):
        return identity_encoder_forward(obs, detach=detach, materialize=materialize)

    def copy_conv_weights_from(self, source):
        pass

    def log(self, L, step, log_freq):
        pass


if __name__ == "__main__":
    key = jax.random.PRNGKey(0)
    k_obs, k_big = jax.random.split(key)

    batch = 2
    feature_dim = 32  # obs_shape = (32,)
    obs = jax.random.normal(k_obs, (batch, feature_dim), dtype=jnp.float32)

    enc = IdentityEncoder((feature_dim,), feature_dim=50,
                          num_layers=2, num_filters=32)

    # Default (recommended) path: zero-work identity.
    out = jax.block_until_ready(enc(obs))
    assert out.shape == obs.shape and out.dtype == obs.dtype
    assert bool(jnp.all(out == obs))

    # Pallas copy kernel path on the same small input (full-array single block).
    out_k = jax.block_until_ready(enc(obs, materialize=True))
    assert out_k.shape == obs.shape and out_k.dtype == obs.dtype
    assert bool(jnp.all(out_k == obs))

    # Exercise the lane-dense reshape path (2048 elems -> (1, 2048) slab).
    x_big = jax.random.normal(k_big, (32, 64), dtype=jnp.float32)
    y_big = jax.block_until_ready(pallas_identity_copy(x_big))
    assert y_big.shape == x_big.shape and y_big.dtype == x_big.dtype
    assert bool(jnp.all(y_big == x_big))

    print("KERNEL_OK")
</pallas_src>

<mosaic_0001>
module attributes {stable_mosaic.version = 11 : i64} {
  func.func @_identity_copy_kernel(%arg0: i32, %arg1: memref<2x32xf32, #tpu.memory_space<vmem>>, %arg2: memref<2x32xf32, #tpu.memory_space<vmem>>) attributes {dimension_semantics = [#tpu.dimension_semantics<parallel>], iteration_bounds = array<i64: 1>, scalar_prefetch = 0 : i64, scratch_operands = 0 : i64, tpu.core_type = #tpu.core_type<tc>, window_params = [{transform_indices = @transform_0, window_bounds = array<i64: 2, 32>}, {transform_indices = @transform_1, window_bounds = array<i64: 2, 32>}]} {
    %c0 = arith.constant 0 : index
    %c0_0 = arith.constant 0 : index
    %0 = vector.load %arg1[%c0, %c0_0] : memref<2x32xf32, #tpu.memory_space<vmem>>, vector<2x32xf32>
    %c0_1 = arith.constant 0 : index
    %c0_2 = arith.constant 0 : index
    %1 = vector.load %arg2[%c0_1, %c0_2] : memref<2x32xf32, #tpu.memory_space<vmem>>, vector<2x32xf32>
    tpu.vector_store %arg2[%c0_1, %c0_2], %0 {strides = array<i32>} : memref<2x32xf32, #tpu.memory_space<vmem>>, vector<2x32xf32>,
    return
  }
  func.func @transform_0(%arg0: i32) -> (i32, i32) {
    %c0_i32 = arith.constant 0 : i32
    %c0_i32_0 = arith.constant 0 : i32
    return %arg0, %c0_i32 : i32, i32
  }
  func.func @transform_1(%arg0: i32) -> (i32, i32) {
    %c0_i32 = arith.constant 0 : i32
    %c0_i32_0 = arith.constant 0 : i32
    return %arg0, %c0_i32 : i32, i32
  }
}

</mosaic_0001>

<bundles_post_ra>
// kernel: tpu_custom_call.1
= control target key start
LH: loop header
LB: loop body
LE: loop exit
PB: predicated region body
PF: predicated region fallthrough
CT: control target
= control target key end

     0   :  { %6 = vsyncpa [#allocation3], 0  ;;  %s125_s0 = inlined_call_operand.hbm [shape: f32[2,32], index: 0, kind: input, shape index: {}]   ;;  %s126_s1 = inlined_call_operand.hbm [shape: f32[2,32], index: 1, kind: output, shape index: {}]  }
   0x1   :  { %7 = vsyncpa [#allocation4], 0  ;;  %s89_s6 = smov [#allocation2]   ;;  %s41_s10 = scalar_lea.hbm %s125_s0, 32 }
   0x2   :  { %s14_s7 = sshll.u32 %s89_s6, 4  ;;  %p42_p0 = scmp.ne.s32.totalorder %s125_s0, %s41_s10  ;;  %s15_s7 = int_to_ptr.vmem [resolvable:$true] %s14_s7 }
   0x3   :  { %p45_p1 = scmp.lt.u32.totalorder %s41_s10, %s125_s0 }
   0x5   :  { %p47_p2 = pnand %p45_p1, %p42_p0 }
   0x7   :  { %50 = shalt.err (!%p47_p2)
}
   0x8   :  { %s51_s15 = scalar_lea.vmem %s15_s7, 32  ;;  %p56_p4 = scmp.lt.s32.totalorder %s15_s7, %s15_s7 }
   0x9   :  { %p52_p3 = scmp.ne.s32.totalorder %s15_s7, %s51_s15  ;;  %p57_p5 = scmp.lt.s32.totalorder %s51_s15, %s51_s15 }
   0xb   :  { %p58_p6 = por %p57_p5, %p56_p4 }
   0xd   :  { %p59_p7 = pnand %p58_p6, %p52_p3 }
   0xf   :  { %62 = shalt.err (!%p59_p7)
}
  0x10   :  { %17 = dma.hbm_to_vmem [thread:$0]  %s125_s0, 32, %s15_s7, [#allocation3]  }
  0x11   :  { %85 = dma.done.wait [#allocation3], 32  }
  0x12   :  { %86 = vsyncadd [#allocation3], 4294967264  ;;  %s90_s18 = smov [#allocation5]   ;;  %vm22_vm0 = vcmask 254976   ;;  %v21_v0 = vld [vmem:[#allocation2] sm:$0x3] }
  0x13   :  { %s30_s19 = sshll.u32 %s90_s18, 4  ;;  %23 = vst.msk [vmem:[#allocation5] sm:$0x3] %vm22_vm0, %v21_v0  ;;  %s31_s19 = int_to_ptr.vmem [resolvable:$true] %s30_s19 }
  0x14   :  { %s63_s20 = scalar_lea.vmem %s31_s19, 32  ;;  %p68_p9 = scmp.lt.s32.totalorder %s31_s19, %s31_s19 }
  0x15   :  { %p64_p8 = scmp.ne.s32.totalorder %s31_s19, %s63_s20  ;;  %p69_p10 = scmp.lt.s32.totalorder %s63_s20, %s63_s20 }
  0x17   :  { %p70_p11 = por %p69_p10, %p68_p9 }
  0x19   :  { %p71_p12 = pnand %p70_p11, %p64_p8 }
  0x1b   :  { %74 = shalt.err (!%p71_p12)
}
  0x1c   :  { %s75_s23 = scalar_lea.hbm %s126_s1, 32 }
  0x1d   :  { %p76_p13 = scmp.ne.s32.totalorder %s126_s1, %s75_s23  ;;  %p79_p0 = scmp.lt.u32.totalorder %s75_s23, %s126_s1 }
  0x1f   :  { %p81_p1 = pnand %p79_p0, %p76_p13 }
  0x21   :  { %84 = shalt.err (!%p81_p1)
}
  0x22   :  { %33 = dma.vmem_to_hbm [thread:$0]  %s31_s19, 32, %s126_s1, [#allocation4]  }
  0x23   :  { %87 = dma.done.wait [#allocation4], 32  }
  0x24   :  { %88 = vsyncadd [#allocation4], 4294967264 }
  0x25   :  { %37 = vsyncpa [#allocation3], 1 }
  0x26   :  { %38 = vsyncpa [#allocation4], 1 }

</bundles_post_ra>
